<compile_context>
chip_gen: v6e
topology: v6e:2x2x1
jax: 0.10.0
libtpu: 0.0.40
codegen_flags: <defaults>
</compile_context>

<pallas_src>
import jax
import jax.numpy as jnp
from jax.experimental import pallas as pl
from jax.experimental.pallas import tpu as pltpu


# ----------------------------- kernel bodies ------------------------------- #

def _mlp_body(x_ref, w1_ref, b1_ref, w2_ref, b2_ref, w3_ref, b3_ref):
    """3-layer ReLU MLP on one row tile; returns the transposed result (128, tm).

    Weights are bf16 (in, out); x is cast to bf16 per tile (VPU, cheap); dots
    accumulate in f32 on the MXU; bias-add / ReLU stay in f32.
    """
    x = x_ref[...].astype(jnp.bfloat16)                                 # (tm, 300)
    h = jnp.dot(x, w1_ref[...], preferred_element_type=jnp.float32) + b1_ref[...]
    h = jnp.maximum(h, 0.0)                                             # (tm, 200)
    h = jnp.dot(h.astype(jnp.bfloat16), w2_ref[...],
                preferred_element_type=jnp.float32) + b2_ref[...]
    h = jnp.maximum(h, 0.0)                                             # (tm, 100)
    y = jnp.dot(h.astype(jnp.bfloat16), w3_ref[...],
                preferred_element_type=jnp.float32) + b3_ref[...]
    y = jnp.maximum(y, 0.0)                                             # (tm, 128)
    return jnp.transpose(y)                                             # (128, tm)


def _mlp_kernel(x_ref, w1_ref, b1_ref, w2_ref, b2_ref, w3_ref, b3_ref, out_ref):
    # Tiled path: store only the 2 meaningful rows (lane-dense along tm).
    yt = _mlp_body(x_ref, w1_ref, b1_ref, w2_ref, b2_ref, w3_ref, b3_ref)
    out_ref[...] = yt[:2, :]


def _ce_rows(l_row, pos, S):
    """Per-example CE of a (1, M) row of flattened (B*S,) logits vs (B,1) targets."""
    B = pos.shape[0]
    M = l_row.shape[1]
    lane = jax.lax.broadcasted_iota(jnp.int32, (B, M), 1)
    row = jax.lax.broadcasted_iota(jnp.int32, (B, M), 0)
    seg = (lane >= row * S) & (lane < (row + 1) * S)          # lanes of example b
    m = jnp.max(jnp.where(seg, l_row, -jnp.inf), axis=1, keepdims=True)      # (B,1)
    se = jnp.sum(jnp.where(seg, jnp.exp(l_row - m), 0.0), axis=1, keepdims=True)
    picked = jnp.sum(jnp.where(lane == row * S + pos, l_row, 0.0),
                     axis=1, keepdims=True)                                   # (B,1)
    return m + jnp.log(se) - picked                                           # (B,1)


def _fused_mlp_loss_kernel(x_ref, w1_ref, b1_ref, w2_ref, b2_ref, w3_ref, b3_ref,
                           ps_ref, pe_ref, out_ref, loss_ref):
    # Small-M path: whole problem in one grid step; logits never leave VMEM.
    yt = _mlp_body(x_ref, w1_ref, b1_ref, w2_ref, b2_ref, w3_ref, b3_ref)
    out_ref[...] = yt[:2, :]
    B = ps_ref.shape[0]
    M = out_ref.shape[1]
    S = M // B
    ce = (_ce_rows(yt[0:1, :], ps_ref[...], S)
          + _ce_rows(yt[1:2, :], pe_ref[...], S))                             # (B,1)
    loss_ref[...] = jnp.sum(ce, axis=0, keepdims=True) * (0.5 / B)


def _qa_loss_kernel(sl_ref, el_ref, ps_ref, pe_ref, loss_ref):
    # Standalone loss kernel for the tiled (large-M) path.
    B, S = sl_ref.shape

    def ce(logits, pos):
        m = jnp.max(logits, axis=-1, keepdims=True)                           # (B,1)
        lse = m + jnp.log(jnp.sum(jnp.exp(logits - m), axis=-1, keepdims=True))
        lane = jax.lax.broadcasted_iota(jnp.int32, (B, S), 1)
        picked = jnp.sum(jnp.where(lane == pos, logits, 0.0),
                         axis=-1, keepdims=True)
        return lse - picked

    per_ex = ce(sl_ref[...], ps_ref[...]) + ce(el_ref[...], pe_ref[...])      # (B,1)
    loss_ref[...] = jnp.sum(per_ex, axis=0, keepdims=True) * (0.5 / B)


# ------------------------------ wrappers ------------------------------------ #

def _round_up(a, b):
    return (a + b - 1) // b * b


def _common_in_specs(D_in, H1, H2, P, tm):
    return [
        pl.BlockSpec((tm, D_in), lambda i: (i, 0)),
        pl.BlockSpec((D_in, H1), lambda i: (0, 0)),
        pl.BlockSpec((1, H1), lambda i: (0, 0)),
        pl.BlockSpec((H1, H2), lambda i: (0, 0)),
        pl.BlockSpec((1, H2), lambda i: (0, 0)),
        pl.BlockSpec((H2, P), lambda i: (0, 0)),
        pl.BlockSpec((1, P), lambda i: (0, 0)),
    ]


def _fused_small_pallas(x2d, w1t, b1, w2t, b2, w3t, b3, ps, pe):
    M, D_in = x2d.shape
    H1, H2, P = w1t.shape[1], w2t.shape[1], w3t.shape[1]
    B = ps.shape[0]
    logits_t, loss = pl.pallas_call(
        _fused_mlp_loss_kernel,
        out_shape=(jax.ShapeDtypeStruct((2, M), jnp.float32),
                   jax.ShapeDtypeStruct((1, 1), jnp.float32)),
        grid_spec=pltpu.PrefetchScalarGridSpec(
            num_scalar_prefetch=0,
            grid=(1,),
            in_specs=_common_in_specs(D_in, H1, H2, P, M) + [
                pl.BlockSpec((B, 1), lambda i: (0, 0)),
                pl.BlockSpec((B, 1), lambda i: (0, 0)),
            ],
            out_specs=[
                pl.BlockSpec((2, M), lambda i: (0, 0)),
                pl.BlockSpec((1, 1), lambda i: (0, 0)),
            ],
        ),
        compiler_params=pltpu.CompilerParams(
            dimension_semantics=("arbitrary",),
            vmem_limit_bytes=32 * 1024 * 1024),
    )(x2d, w1t, b1, w2t, b2, w3t, b3, ps, pe)
    return logits_t, loss[0, 0]


def _mlp_tiled_pallas(x2d, w1t, b1, w2t, b2, w3t, b3):
    M, D_in = x2d.shape
    H1, H2, P = w1t.shape[1], w2t.shape[1], w3t.shape[1]
    # >= 2 tiles whenever M > 512 (v7x megacore), lane-aligned (mult. of 128),
    # capped at 1024 rows (safe under v5e's 16 MiB default scoped VMEM too).
    tm = min(1024, _round_up(pl.cdiv(M, 2), 128))
    grid = (pl.cdiv(M, tm),)   # partial last block: masked reads/writes, no pad copy
    return pl.pallas_call(
        _mlp_kernel,
        out_shape=jax.ShapeDtypeStruct((2, M), jnp.float32),
        grid_spec=pltpu.PrefetchScalarGridSpec(
            num_scalar_prefetch=0,
            grid=grid,
            in_specs=_common_in_specs(D_in, H1, H2, P, tm),
            out_specs=pl.BlockSpec((2, tm), lambda i: (0, i)),
        ),
        compiler_params=pltpu.CompilerParams(
            dimension_semantics=("parallel",),
            vmem_limit_bytes=32 * 1024 * 1024),
    )(x2d, w1t, b1, w2t, b2, w3t, b3)


def _qa_loss_pallas(start_logits, end_logits, ps, pe):
    B, S = start_logits.shape
    loss = pl.pallas_call(
        _qa_loss_kernel,
        out_shape=jax.ShapeDtypeStruct((1, 1), jnp.float32),
        grid_spec=pltpu.PrefetchScalarGridSpec(
            num_scalar_prefetch=0,
            grid=(1,),
            in_specs=[
                pl.BlockSpec((B, S), lambda i: (0, 0)),
                pl.BlockSpec((B, S), lambda i: (0, 0)),
                pl.BlockSpec((B, 1), lambda i: (0, 0)),
                pl.BlockSpec((B, 1), lambda i: (0, 0)),
            ],
            out_specs=pl.BlockSpec((1, 1), lambda i: (0, 0)),
        ),
    )(start_logits, end_logits, ps, pe)
    return loss[0, 0]


def wordembedqa_forward(x, w1, b1, w2, b2, w3, b3, start_positions, end_positions):
    """x: (B, S, 300) f32; torch-layout weights w1:(200,300), w2:(100,200), w3:(2,100)."""
    B, S, D_in = x.shape
    H1, H2 = w1.shape[0], w2.shape[0]
    M = B * S
    P = 128

    # One-time glue: flatten rows, transpose weights to (in, out), cast matmul
    # operands to bf16 (MXU-native single pass), pad qa_outputs to 128 output
    # lanes so the final MXU pass / transpose work on a clean (tm, 128) tile.
    x2d = x.reshape(M, D_in)
    w1t = w1.T.astype(jnp.bfloat16)
    w2t = w2.T.astype(jnp.bfloat16)
    w3t = jnp.zeros((H2, P), jnp.bfloat16).at[:, :2].set(w3.T.astype(jnp.bfloat16))
    b1r = b1.reshape(1, H1).astype(jnp.float32)
    b2r = b2.reshape(1, H2).astype(jnp.float32)
    b3r = jnp.zeros((1, P), jnp.float32).at[:, :2].set(b3.reshape(1, 2))
    ps = start_positions.reshape(B, 1).astype(jnp.int32)
    pe = end_positions.reshape(B, 1).astype(jnp.int32)

    if M <= 512:
        # Single fused launch: MLP + both CE losses; logits never leave VMEM.
        logits_t, total_loss = _fused_small_pallas(
            x2d, w1t, b1r, w2t, b2r, w3t, b3r, ps, pe)
    else:
        # Row-tiled MLP (>= 2 tiles -> v7x megacore), then a tiny loss kernel.
        logits_t = _mlp_tiled_pallas(x2d, w1t, b1r, w2t, b2r, w3t, b3r)
        total_loss = _qa_loss_pallas(logits_t[0].reshape(B, S),
                                     logits_t[1].reshape(B, S), ps, pe)

    start_logits = logits_t[0].reshape(B, S)
    end_logits = logits_t[1].reshape(B, S)
    return total_loss, start_logits, end_logits


# ------------------------------ reference ----------------------------------- #

def _reference(x, w1, b1, w2, b2, w3, b3, sp, ep, bf16_matmul=False):
    if bf16_matmul:
        def lin(a, w, b):
            return jnp.dot(a.astype(jnp.bfloat16), w.T.astype(jnp.bfloat16),
                           preferred_element_type=jnp.float32) + b
    else:
        def lin(a, w, b):
            return jnp.dot(a, w.T, precision=jax.lax.Precision.HIGHEST) + b

    h = jax.nn.relu(lin(x, w1, b1))
    h = jax.nn.relu(lin(h, w2, b2))
    logits = jax.nn.relu(lin(h, w3, b3))
    sl, el = logits[..., 0], logits[..., 1]

    def ce(lg, tgt):
        ls = jax.nn.log_softmax(lg, axis=-1)
        return -jnp.mean(jnp.take_along_axis(ls, tgt[:, None], axis=-1)[:, 0])

    return 0.5 * (ce(sl, sp) + ce(el, ep)), sl, el


# -------------------------------- main --------------------------------------- #

def _run_case(name, B, S, key):
    D_in, H1, H2 = 300, 200, 100
    kx, k1, kb1, k2, kb2, k3, kb3, kps, kpe = jax.random.split(key, 9)
    x = jax.random.normal(kx, (B, S, D_in), dtype=jnp.float32)
    w1 = jax.random.normal(k1, (H1, D_in), dtype=jnp.float32) * 0.05
    b1 = jax.random.normal(kb1, (H1,), dtype=jnp.float32) * 0.05
    w2 = jax.random.normal(k2, (H2, H1), dtype=jnp.float32) * 0.05
    b2 = jax.random.normal(kb2, (H2,), dtype=jnp.float32) * 0.05
    w3 = jax.random.normal(k3, (2, H2), dtype=jnp.float32) * 0.1
    b3 = jax.random.normal(kb3, (2,), dtype=jnp.float32) * 0.1
    sp = jax.random.randint(kps, (B,), 0, S, dtype=jnp.int32)
    ep = jax.random.randint(kpe, (B,), 0, S, dtype=jnp.int32)

    loss, sl, el = jax.block_until_ready(
        wordembedqa_forward(x, w1, b1, w2, b2, w3, b3, sp, ep))

    assert sl.shape == (B, S), (name, sl.shape)
    assert el.shape == (B, S), (name, el.shape)
    assert loss.shape == (), (name, loss.shape)

    # Tight check vs a bf16-matmul JAX reference (matches kernel numerics).
    bloss, bsl, bel = _reference(x, w1, b1, w2, b2, w3, b3, sp, ep,
                                 bf16_matmul=True)
    assert jnp.allclose(sl, bsl, atol=1e-3, rtol=1e-3), \
        (name, float(jnp.abs(sl - bsl).max()))
    assert jnp.allclose(el, bel, atol=1e-3, rtol=1e-3), \
        (name, float(jnp.abs(el - bel).max()))
    assert jnp.allclose(loss, bloss, atol=1e-3, rtol=1e-3), \
        (name, float(loss), float(bloss))

    # Sanity check vs full-f32 reference (bf16 MXU operands => looser tolerance).
    floss, fsl, fel = _reference(x, w1, b1, w2, b2, w3, b3, sp, ep,
                                 bf16_matmul=False)
    assert jnp.allclose(sl, fsl, atol=2e-2, rtol=2e-2), \
        (name, float(jnp.abs(sl - fsl).max()))
    assert jnp.allclose(el, fel, atol=2e-2, rtol=2e-2), \
        (name, float(jnp.abs(el - fel).max()))
    assert jnp.allclose(loss, floss, atol=2e-2, rtol=2e-2), \
        (name, float(loss), float(floss))


if __name__ == "__main__":
    key = jax.random.PRNGKey(0)
    k_small, k_big = jax.random.split(key)
    # Small path: single fused MLP + CE-loss kernel (grid=(1,)), M = 32.
    _run_case("fused_small", B=2, S=16, key=k_small)
    # Tiled path: M = 600 > 512 -> 2 row tiles of 384 (partial last block,
    # no pad copy) + standalone loss kernel.
    _run_case("tiled", B=2, S=300, key=k_big)
    print("KERNEL_OK")
</pallas_src>

<mosaic_0001>
module attributes {stable_mosaic.version = 11 : i64} {
  func.func @_fused_mlp_loss_kernel(%arg0: i32, %arg1: memref<32x300xf32, #tpu.memory_space<vmem>>, %arg2: memref<300x200xbf16, #tpu.memory_space<vmem>>, %arg3: memref<1x200xf32, #tpu.memory_space<vmem>>, %arg4: memref<200x100xbf16, #tpu.memory_space<vmem>>, %arg5: memref<1x100xf32, #tpu.memory_space<vmem>>, %arg6: memref<100x128xbf16, #tpu.memory_space<vmem>>, %arg7: memref<1x128xf32, #tpu.memory_space<vmem>>, %arg8: memref<2x1xi32, #tpu.memory_space<vmem>>, %arg9: memref<2x1xi32, #tpu.memory_space<vmem>>, %arg10: memref<2x32xf32, #tpu.memory_space<vmem>>, %arg11: memref<1x1xf32, #tpu.memory_space<vmem>>) attributes {dimension_semantics = [#tpu.dimension_semantics<arbitrary>], iteration_bounds = array<i64: 1>, scalar_prefetch = 0 : i64, scratch_operands = 0 : i64, tpu.core_type = #tpu.core_type<tc>, window_params = [{transform_indices = @transform_0, window_bounds = array<i64: 32, 300>}, {pipeline_mode = #tpu.pipeline_mode<synchronous>, transform_indices = @transform_1, window_bounds = array<i64: 300, 200>}, {pipeline_mode = #tpu.pipeline_mode<synchronous>, transform_indices = @transform_2, window_bounds = array<i64: 1, 200>}, {pipeline_mode = #tpu.pipeline_mode<synchronous>, transform_indices = @transform_3, window_bounds = array<i64: 200, 100>}, {pipeline_mode = #tpu.pipeline_mode<synchronous>, transform_indices = @transform_4, window_bounds = array<i64: 1, 100>}, {pipeline_mode = #tpu.pipeline_mode<synchronous>, transform_indices = @transform_5, window_bounds = array<i64: 100, 128>}, {pipeline_mode = #tpu.pipeline_mode<synchronous>, transform_indices = @transform_6, window_bounds = array<i64: 1, 128>}, {pipeline_mode = #tpu.pipeline_mode<synchronous>, transform_indices = @transform_7, window_bounds = array<i64: 2, 1>}, {pipeline_mode = #tpu.pipeline_mode<synchronous>, transform_indices = @transform_8, window_bounds = array<i64: 2, 1>}, {pipeline_mode = #tpu.pipeline_mode<synchronous>, transform_indices = @transform_9, window_bounds = array<i64: 2, 32>}, {pipeline_mode = #tpu.pipeline_mode<synchronous>, transform_indices = @transform_10, window_bounds = array<i64: 1, 1>}]} {
    %c0 = arith.constant 0 : index
    %c0_0 = arith.constant 0 : index
    %0 = vector.load %arg1[%c0, %c0_0] : memref<32x300xf32, #tpu.memory_space<vmem>>, vector<32x300xf32>
    %1 = arith.truncf %0 : vector<32x300xf32> to vector<32x300xbf16>
    %c0_1 = arith.constant 0 : index
    %c0_2 = arith.constant 0 : index
    %2 = vector.load %arg2[%c0_1, %c0_2] : memref<300x200xbf16, #tpu.memory_space<vmem>>, vector<300x200xbf16>
    %cst = arith.constant dense<0.000000e+00> : vector<32x200xf32>
    %3 = tpu.matmul %1, %2, %cst {dimension_numbers = #tpu.dot_dimension_numbers<[1], [0], [0], [1], [0, 0, 1, 1], [], []>} : vector<32x300xbf16>, vector<300x200xbf16>, vector<32x200xf32> -> vector<32x200xf32>
    %c0_3 = arith.constant 0 : index
    %c0_4 = arith.constant 0 : index
    %4 = vector.load %arg3[%c0_3, %c0_4] : memref<1x200xf32, #tpu.memory_space<vmem>>, vector<1x200xf32>
    %5 = vector.broadcast %4 : vector<1x200xf32> to vector<32x200xf32>
    %6 = arith.addf %3, %5 : vector<32x200xf32>
    %cst_5 = arith.constant 0.000000e+00 : f32
    %7 = vector.broadcast %cst_5 : f32 to vector<32x200xf32>
    %8 = arith.maximumf %6, %7 : vector<32x200xf32>
    %9 = arith.truncf %8 : vector<32x200xf32> to vector<32x200xbf16>
    %c0_6 = arith.constant 0 : index
    %c0_7 = arith.constant 0 : index
    %10 = vector.load %arg4[%c0_6, %c0_7] : memref<200x100xbf16, #tpu.memory_space<vmem>>, vector<200x100xbf16>
    %cst_8 = arith.constant dense<0.000000e+00> : vector<32x100xf32>
    %11 = tpu.matmul %9, %10, %cst_8 {dimension_numbers = #tpu.dot_dimension_numbers<[1], [0], [0], [1], [0, 0, 1, 1], [], []>} : vector<32x200xbf16>, vector<200x100xbf16>, vector<32x100xf32> -> vector<32x100xf32>
    %c0_9 = arith.constant 0 : index
    %c0_10 = arith.constant 0 : index
    %12 = vector.load %arg5[%c0_9, %c0_10] : memref<1x100xf32, #tpu.memory_space<vmem>>, vector<1x100xf32>
    %13 = vector.broadcast %12 : vector<1x100xf32> to vector<32x100xf32>
    %14 = arith.addf %11, %13 : vector<32x100xf32>
    %cst_11 = arith.constant 0.000000e+00 : f32
    %15 = vector.broadcast %cst_11 : f32 to vector<32x100xf32>
    %16 = arith.maximumf %14, %15 : vector<32x100xf32>
    %17 = arith.truncf %16 : vector<32x100xf32> to vector<32x100xbf16>
    %c0_12 = arith.constant 0 : index
    %c0_13 = arith.constant 0 : index
    %18 = vector.load %arg6[%c0_12, %c0_13] : memref<100x128xbf16, #tpu.memory_space<vmem>>, vector<100x128xbf16>
    %cst_14 = arith.constant dense<0.000000e+00> : vector<32x128xf32>
    %19 = tpu.matmul %17, %18, %cst_14 {dimension_numbers = #tpu.dot_dimension_numbers<[1], [0], [0], [1], [0, 0, 1, 1], [], []>} : vector<32x100xbf16>, vector<100x128xbf16>, vector<32x128xf32> -> vector<32x128xf32>
    %c0_15 = arith.constant 0 : index
    %c0_16 = arith.constant 0 : index
    %20 = vector.load %arg7[%c0_15, %c0_16] : memref<1x128xf32, #tpu.memory_space<vmem>>, vector<1x128xf32>
    %21 = vector.broadcast %20 : vector<1x128xf32> to vector<32x128xf32>
    %22 = arith.addf %19, %21 : vector<32x128xf32>
    %cst_17 = arith.constant 0.000000e+00 : f32
    %23 = vector.broadcast %cst_17 : f32 to vector<32x128xf32>
    %24 = arith.maximumf %22, %23 : vector<32x128xf32>
    %25 = tpu.transpose %24, [1, 0] : vector<32x128xf32> -> vector<128x32xf32>
    %26 = vector.extract_strided_slice %25 {offsets = [0, 0], sizes = [2, 32], strides = [1, 1]} : vector<128x32xf32> to vector<2x32xf32>
    %c0_18 = arith.constant 0 : index
    %c0_19 = arith.constant 0 : index
    %27 = vector.load %arg10[%c0_18, %c0_19] : memref<2x32xf32, #tpu.memory_space<vmem>>, vector<2x32xf32>
    tpu.vector_store %arg10[%c0_18, %c0_19], %26 {strides = array<i32>} : memref<2x32xf32, #tpu.memory_space<vmem>>, vector<2x32xf32>,
    %28 = vector.extract_strided_slice %25 {offsets = [0, 0], sizes = [1, 32], strides = [1, 1]} : vector<128x32xf32> to vector<1x32xf32>
    %c0_20 = arith.constant 0 : index
    %c0_21 = arith.constant 0 : index
    %29 = vector.load %arg8[%c0_20, %c0_21] : memref<2x1xi32, #tpu.memory_space<vmem>>, vector<2x1xi32>
    %30 = tpu.iota {dimensions = array<i32: 1>} : vector<2x32xi32>
    %31 = tpu.iota {dimensions = array<i32: 0>} : vector<2x32xi32>
    %c16_i32 = arith.constant 16 : i32
    %32 = vector.broadcast %c16_i32 : i32 to vector<2x32xi32>
    %33 = arith.muli %31, %32 : vector<2x32xi32>
    %34 = arith.cmpi sge, %30, %33 : vector<2x32xi32>
    %c1_i32 = arith.constant 1 : i32
    %35 = vector.broadcast %c1_i32 : i32 to vector<2x32xi32>
    %36 = arith.addi %31, %35 : vector<2x32xi32>
    %c16_i32_22 = arith.constant 16 : i32
    %37 = vector.broadcast %c16_i32_22 : i32 to vector<2x32xi32>
    %38 = arith.muli %36, %37 : vector<2x32xi32>
    %39 = arith.cmpi slt, %30, %38 : vector<2x32xi32>
    %40 = arith.andi %34, %39 : vector<2x32xi1>
    %cst_23 = arith.constant 0xFF800000 : f32
    %41 = vector.shape_cast %28 : vector<1x32xf32> to vector<1x32xf32>
    %42 = vector.broadcast %41 : vector<1x32xf32> to vector<2x32xf32>
    %43 = vector.broadcast %cst_23 : f32 to vector<2x32xf32>
    %44 = arith.select %40, %42, %43 : vector<2x32xi1>, vector<2x32xf32>
    %cst_24 = arith.constant dense<0xFF800000> : vector<2xf32>
    %45 = vector.multi_reduction <maximumf>, %44, %cst_24 [1] : vector<2x32xf32> to vector<2xf32>
    %46 = vector.shape_cast %45 : vector<2xf32> to vector<2x1xf32>
    %47 = vector.broadcast %28 : vector<1x32xf32> to vector<2x32xf32>
    %48 = vector.broadcast %46 : vector<2x1xf32> to vector<2x32xf32>
    %49 = arith.subf %47, %48 : vector<2x32xf32>
    %50 = math.exp %49 : vector<2x32xf32>
    %cst_25 = arith.constant 0.000000e+00 : f32
    %51 = vector.broadcast %cst_25 : f32 to vector<2x32xf32>
    %52 = arith.select %40, %50, %51 : vector<2x32xi1>, vector<2x32xf32>
    %cst_26 = arith.constant dense<0.000000e+00> : vector<2xf32>
    %53 = vector.multi_reduction <add>, %52, %cst_26 [1] : vector<2x32xf32> to vector<2xf32>
    %54 = vector.shape_cast %53 : vector<2xf32> to vector<2x1xf32>
    %c16_i32_27 = arith.constant 16 : i32
    %55 = vector.broadcast %c16_i32_27 : i32 to vector<2x32xi32>
    %56 = arith.muli %31, %55 : vector<2x32xi32>
    %57 = vector.broadcast %29 : vector<2x1xi32> to vector<2x32xi32>
    %58 = arith.addi %56, %57 : vector<2x32xi32>
    %59 = arith.cmpi eq, %30, %58 : vector<2x32xi32>
    %cst_28 = arith.constant 0.000000e+00 : f32
    %60 = vector.shape_cast %28 : vector<1x32xf32> to vector<1x32xf32>
    %61 = vector.broadcast %60 : vector<1x32xf32> to vector<2x32xf32>
    %62 = vector.broadcast %cst_28 : f32 to vector<2x32xf32>
    %63 = arith.select %59, %61, %62 : vector<2x32xi1>, vector<2x32xf32>
    %cst_29 = arith.constant dense<0.000000e+00> : vector<2xf32>
    %64 = vector.multi_reduction <add>, %63, %cst_29 [1] : vector<2x32xf32> to vector<2xf32>
    %65 = vector.shape_cast %64 : vector<2xf32> to vector<2x1xf32>
    %66 = math.log %54 : vector<2x1xf32>
    %67 = arith.addf %46, %66 : vector<2x1xf32>
    %68 = arith.subf %67, %65 : vector<2x1xf32>
    %69 = vector.extract_strided_slice %25 {offsets = [1, 0], sizes = [1, 32], strides = [1, 1]} : vector<128x32xf32> to vector<1x32xf32>
    %c0_30 = arith.constant 0 : index
    %c0_31 = arith.constant 0 : index
    %70 = vector.load %arg9[%c0_30, %c0_31] : memref<2x1xi32, #tpu.memory_space<vmem>>, vector<2x1xi32>
    %71 = tpu.iota {dimensions = array<i32: 1>} : vector<2x32xi32>
    %72 = tpu.iota {dimensions = array<i32: 0>} : vector<2x32xi32>
    %c16_i32_32 = arith.constant 16 : i32
    %73 = vector.broadcast %c16_i32_32 : i32 to vector<2x32xi32>
    %74 = arith.muli %72, %73 : vector<2x32xi32>
    %75 = arith.cmpi sge, %71, %74 : vector<2x32xi32>
    %c1_i32_33 = arith.constant 1 : i32
    %76 = vector.broadcast %c1_i32_33 : i32 to vector<2x32xi32>
    %77 = arith.addi %72, %76 : vector<2x32xi32>
    %c16_i32_34 = arith.constant 16 : i32
    %78 = vector.broadcast %c16_i32_34 : i32 to vector<2x32xi32>
    %79 = arith.muli %77, %78 : vector<2x32xi32>
    %80 = arith.cmpi slt, %71, %79 : vector<2x32xi32>
    %81 = arith.andi %75, %80 : vector<2x32xi1>
    %cst_35 = arith.constant 0xFF800000 : f32
    %82 = vector.shape_cast %69 : vector<1x32xf32> to vector<1x32xf32>
    %83 = vector.broadcast %82 : vector<1x32xf32> to vector<2x32xf32>
    %84 = vector.broadcast %cst_35 : f32 to vector<2x32xf32>
    %85 = arith.select %81, %83, %84 : vector<2x32xi1>, vector<2x32xf32>
    %cst_36 = arith.constant dense<0xFF800000> : vector<2xf32>
    %86 = vector.multi_reduction <maximumf>, %85, %cst_36 [1] : vector<2x32xf32> to vector<2xf32>
    %87 = vector.shape_cast %86 : vector<2xf32> to vector<2x1xf32>
    %88 = vector.broadcast %69 : vector<1x32xf32> to vector<2x32xf32>
    %89 = vector.broadcast %87 : vector<2x1xf32> to vector<2x32xf32>
    %90 = arith.subf %88, %89 : vector<2x32xf32>
    %91 = math.exp %90 : vector<2x32xf32>
    %cst_37 = arith.constant 0.000000e+00 : f32
    %92 = vector.broadcast %cst_37 : f32 to vector<2x32xf32>
    %93 = arith.select %81, %91, %92 : vector<2x32xi1>, vector<2x32xf32>
    %cst_38 = arith.constant dense<0.000000e+00> : vector<2xf32>
    %94 = vector.multi_reduction <add>, %93, %cst_38 [1] : vector<2x32xf32> to vector<2xf32>
    %95 = vector.shape_cast %94 : vector<2xf32> to vector<2x1xf32>
    %c16_i32_39 = arith.constant 16 : i32
    %96 = vector.broadcast %c16_i32_39 : i32 to vector<2x32xi32>
    %97 = arith.muli %72, %96 : vector<2x32xi32>
    %98 = vector.broadcast %70 : vector<2x1xi32> to vector<2x32xi32>
    %99 = arith.addi %97, %98 : vector<2x32xi32>
    %100 = arith.cmpi eq, %71, %99 : vector<2x32xi32>
    %cst_40 = arith.constant 0.000000e+00 : f32
    %101 = vector.shape_cast %69 : vector<1x32xf32> to vector<1x32xf32>
    %102 = vector.broadcast %101 : vector<1x32xf32> to vector<2x32xf32>
    %103 = vector.broadcast %cst_40 : f32 to vector<2x32xf32>
    %104 = arith.select %100, %102, %103 : vector<2x32xi1>, vector<2x32xf32>
    %cst_41 = arith.constant dense<0.000000e+00> : vector<2xf32>
    %105 = vector.multi_reduction <add>, %104, %cst_41 [1] : vector<2x32xf32> to vector<2xf32>
    %106 = vector.shape_cast %105 : vector<2xf32> to vector<2x1xf32>
    %107 = math.log %95 : vector<2x1xf32>
    %108 = arith.addf %87, %107 : vector<2x1xf32>
    %109 = arith.subf %108, %106 : vector<2x1xf32>
    %110 = arith.addf %68, %109 : vector<2x1xf32>
    %cst_42 = arith.constant dense<0.000000e+00> : vector<1xf32>
    %111 = vector.multi_reduction <add>, %110, %cst_42 [0] : vector<2x1xf32> to vector<1xf32>
    %112 = vector.shape_cast %111 : vector<1xf32> to vector<1x1xf32>
    %cst_43 = arith.constant 2.500000e-01 : f32
    %113 = vector.broadcast %cst_43 : f32 to vector<1x1xf32>
    %114 = arith.mulf %112, %113 : vector<1x1xf32>
    %c0_44 = arith.constant 0 : index
    %c0_45 = arith.constant 0 : index
    %115 = vector.load %arg11[%c0_44, %c0_45] : memref<1x1xf32, #tpu.memory_space<vmem>>, vector<1x1xf32>
    tpu.vector_store %arg11[%c0_44, %c0_45], %114 {strides = array<i32>} : memref<1x1xf32, #tpu.memory_space<vmem>>, vector<1x1xf32>,
    return
  }
  func.func @transform_0(%arg0: i32) -> (i32, i32) {
    %c0_i32 = arith.constant 0 : i32
    %c0_i32_0 = arith.constant 0 : i32
    return %arg0, %c0_i32 : i32, i32
  }
  func.func @transform_1(%arg0: i32) -> (i32, i32) {
    %c0_i32 = arith.constant 0 : i32
    %c0_i32_0 = arith.constant 0 : i32
    %c0_i32_1 = arith.constant 0 : i32
    return %c0_i32, %c0_i32_0 : i32, i32
  }
  func.func @transform_2(%arg0: i32) -> (i32, i32) {
    %c0_i32 = arith.constant 0 : i32
    %c0_i32_0 = arith.constant 0 : i32
    %c0_i32_1 = arith.constant 0 : i32
    return %c0_i32, %c0_i32_0 : i32, i32
  }
  func.func @transform_3(%arg0: i32) -> (i32, i32) {
    %c0_i32 = arith.constant 0 : i32
    %c0_i32_0 = arith.constant 0 : i32
    %c0_i32_1 = arith.constant 0 : i32
    return %c0_i32, %c0_i32_0 : i32, i32
  }
  func.func @transform_4(%arg0: i32) -> (i32, i32) {
    %c0_i32 = arith.constant 0 : i32
    %c0_i32_0 = arith.constant 0 : i32
    %c0_i32_1 = arith.constant 0 : i32
    return %c0_i32, %c0_i32_0 : i32, i32
  }
  func.func @transform_5(%arg0: i32) -> (i32, i32) {
    %c0_i32 = arith.constant 0 : i32
    %c0_i32_0 = arith.constant 0 : i32
    %c0_i32_1 = arith.constant 0 : i32
    return %c0_i32, %c0_i32_0 : i32, i32
  }
  func.func @transform_6(%arg0: i32) -> (i32, i32) {
    %c0_i32 = arith.constant 0 : i32
    %c0_i32_0 = arith.constant 0 : i32
    %c0_i32_1 = arith.constant 0 : i32
    return %c0_i32, %c0_i32_0 : i32, i32
  }
  func.func @transform_7(%arg0: i32) -> (i32, i32) {
    %c0_i32 = arith.constant 0 : i32
    %c0_i32_0 = arith.constant 0 : i32
    %c0_i32_1 = arith.constant 0 : i32
    return %c0_i32, %c0_i32_0 : i32, i32
  }
  func.func @transform_8(%arg0: i32) -> (i32, i32) {
    %c0_i32 = arith.constant 0 : i32
    %c0_i32_0 = arith.constant 0 : i32
    %c0_i32_1 = arith.constant 0 : i32
    return %c0_i32, %c0_i32_0 : i32, i32
  }
  func.func @transform_9(%arg0: i32) -> (i32, i32) {
    %c0_i32 = arith.constant 0 : i32
    %c0_i32_0 = arith.constant 0 : i32
    %c0_i32_1 = arith.constant 0 : i32
    return %c0_i32, %c0_i32_0 : i32, i32
  }
  func.func @transform_10(%arg0: i32) -> (i32, i32) {
    %c0_i32 = arith.constant 0 : i32
    %c0_i32_0 = arith.constant 0 : i32
    %c0_i32_1 = arith.constant 0 : i32
    return %c0_i32, %c0_i32_0 : i32, i32
  }
}

</mosaic_0001>

<bundles_post_ra>
// kernel: tpu_custom_call.1
= control target key start
LH: loop header
LB: loop body
LE: loop exit
PB: predicated region body
PF: predicated region fallthrough
CT: control target
= control target key end

     0   :  { %16 = vsyncpa [#allocation3], 0  ;;  %v1092_v2 = vmov 0   ;;  %vm300_vm0 = vcmask 1045504   ;;  %vm293_vm1 = vcmask 359424   ;;  %s1440_s0 = inlined_call_operand.vmem [shape: f32[32,300], index: 0, kind: input, shape index: {}]   ;;  %s1441_s1 = inlined_call_operand.vmem [shape: bf16[300,200], index: 1, kind: input, shape index: {}]   ;;  %s1442_s2 = inlined_call_operand.vmem [shape: f32[1,200], index: 2, kind: input, shape index: {}]   ;;  %s1443_s3 = inlined_call_operand.vmem [shape: bf16[200,100], index: 3, kind: input, shape index: {}]   ;;  %s1444_s4 = inlined_call_operand.vmem [shape: f32[1,100], index: 4, kind: input, shape index: {}]   ;;  %s1445_s5 = inlined_call_operand.vmem [shape: bf16[100,128], index: 5, kind: input, shape index: {}]   ;;  %s1446_s6 = inlined_call_operand.vmem [shape: f32[1,128], index: 6, kind: input, shape index: {}]   ;;  %s1447_s7 = inlined_call_operand.vmem [shape: s32[2,1], index: 7, kind: input, shape index: {}]   ;;  %s1448_s8 = inlined_call_operand.vmem [shape: s32[2,1], index: 8, kind: input, shape index: {}]   ;;  %s1449_s9 = inlined_call_operand.hbm [shape: f32[2,32], index: 9, kind: output, shape index: {0}]   ;;  %s1450_s10 = inlined_call_operand.hbm [shape: f32[1,1], index: 10, kind: output, shape index: {1}]  }
   0x1   :  { %v963_v0 = vld [vmem:[%s1441_s1 + $0x74] ss:$8 sps:$4 sm:$0xff]   ;;  %v965_v1 = vld [vmem:[%s1441_s1 + $0x70] ss:$8 sps:$4 sm:$0xff]   ;;  %392 = vmatprep.mubr.bf16.mxu1 %v1092_v2  ;;  %961 = vset.pattern.permute.xlu1 %v1092_v2  ;;  %v966_v3 = vld [vmem:[%s1441_s1 + $0x64] ss:$8 sps:$4 sm:$0xff]  }
   0x2   :  { %307 = vmatprep.subr.bf16.mxu0 %v963_v0  ;;  %v968_v4 = vld [vmem:[%s1441_s1 + $0x60] ss:$8 sps:$4 sm:$0xff]   ;;  %v969_v5 = vld [vmem:[%s1441_s1 + $0x54] ss:$8 sps:$4 sm:$0xff]   ;;  %v971_v6 = vld [vmem:[%s1441_s1 + $0x50] ss:$8 sps:$4 sm:$0xff]  }
   0x3   :  { %308 = vmatpush1.bf16.msra.mxu0 %v965_v1  ;;  %v972_v7 = vld [vmem:[%s1441_s1 + $0x44] ss:$8 sps:$4 sm:$0xff]   ;;  %v974_v8 = vld [vmem:[%s1441_s1 + $0x40] ss:$8 sps:$4 sm:$0xff]   ;;  %v975_v9 = vld [vmem:[%s1441_s1 + $0x34] ss:$8 sps:$4 sm:$0xff]  }
   0x4   :  { %309 = vmatprep.subr.bf16.mxu0 %v966_v3  ;;  %v977_v10 = vld [vmem:[%s1441_s1 + $0x30] ss:$8 sps:$4 sm:$0xff]   ;;  %v978_v11 = vld [vmem:[%s1441_s1 + $0x24] ss:$8 sps:$4 sm:$0xff]   ;;  %v980_v14 = vld [vmem:[%s1441_s1 + $0x20] ss:$8 sps:$4 sm:$0xff]  }
   0x5   :  { %v1001_v12 = vld [vmem:[%s1441_s1 + $0x124] ss:$8 sps:$4 sm:$0x3f]   ;;  %v1004_v13 = vld [vmem:[%s1441_s1 + $0x120] ss:$8 sps:$4 sm:$0x3f]  }
   0x6   :  { %900 = vmatprep.subr.msk.bf16.mxu1 %vm300_vm0, %v1001_v12  ;;  %v981_v15 = vld [vmem:[%s1441_s1 + $0x14] ss:$8 sps:$4 sm:$0xff]   ;;  %v302_v16 = vsel %vm300_vm0, %v1004_v13, 0  ;;  %v1010_v18 = vld [vmem:[%s1441_s1 + $0x110] ss:$8 sps:$4 sm:$0xff]   ;;  %v42_v24 = vld [vmem:[%s1440_s0 + $0x28] sm:$0xff] }
   0x7   :  { %310 = vmatpush1.bf16.msra.mxu0 %v968_v4  ;;  %v1007_v17 = vld [vmem:[%s1441_s1 + $0x114] ss:$8 sps:$4 sm:$0xff]   ;;  %371 = vmatpush1.bf16.msra.mxu1 %v302_v16  ;;  %v983_v19 = vld [vmem:[%s1441_s1 + $0x10] ss:$8 sps:$4 sm:$0xff]   ;;  %v1013_v20 = vld [vmem:[%s1441_s1 + $0x104] ss:$8 sps:$4 sm:$0xff]  }
   0x8   :  { %311 = vmatprep.subr.bf16.mxu0 %v969_v5  ;;  %372 = vmatprep.subr.bf16.mxu1 %v1007_v17  ;;  %v984_v21 = vld [vmem:[%s1441_s1 + $0x4] ss:$8 sps:$4 sm:$0xff]   ;;  %v1016_v22 = vld [vmem:[%s1441_s1 + $0x100] ss:$8 sps:$4 sm:$0xff]   ;;  %v39_v23 = vld [vmem:[%s1440_s0 + $0x10] sm:$0xff] }
   0x9   :  { %v38_v25 = vld [vmem:[%s1440_s0 + $0x8] sm:$0xff]  ;;  %v41_v26 = vld [vmem:[%s1440_s0 + $0x20] sm:$0xff]  ;;  %v987_v29 = vld [vmem:[%s1441_s1 + $0xf4] ss:$8 sps:$4 sm:$0xff]   ;;  %v51_v30 = vpack.c.bf16 %v42_v24, %v39_v23 }
   0xa   :  { %v986_v27 = vld [vmem:[%s1441_s1] ss:$8 sps:$4 sm:$0xff]   ;;  %v50_v28 = vpack.c.bf16 %v41_v26, %v38_v25  ;;  %v989_v31 = vld [vmem:[%s1441_s1 + $0xf0] ss:$8 sps:$4 sm:$0xff]   ;;  %v990_v32 = vld [vmem:[%s1441_s1 + $0xe4] ss:$8 sps:$4 sm:$0xff]  }
   0xb   :  { %312 = vmatpush1.bf16.msra.mxu0 %v971_v6  ;;  %373 = vmatpush1.bf16.msra.mxu1 %v1010_v18  ;;  %v1020_v33 = vld [vmem:[%s1443_s3 + $0x38] sm:$0xff]   ;;  %v45_v34 = vld [vmem:[%s1440_s0 + $0x40] sm:$0xff]  ;;  %v1021_v36 = vld [vmem:[%s1443_s3 + $0x30] sm:$0xff]  }
   0xc   :  { %313 = vmatprep.subr.bf16.mxu0 %v972_v7  ;;  %374 = vmatprep.subr.bf16.mxu1 %v1013_v20  ;;  %v48_v35 = vld [vmem:[%s1440_s0 + $0x58] sm:$0xff]  ;;  %v992_v37 = vld [vmem:[%s1441_s1 + $0xe0] ss:$8 sps:$4 sm:$0xff]   ;;  %v996_v42 = vld [vmem:[%s1441_s1 + $0xc4] ss:$8 sps:$4 sm:$0xff]  }
   0xd   :  { %339 = vmatprep.mubr.bf16.mxu0 %v50_v28  ;;  %v993_v38 = vld [vmem:[%s1441_s1 + $0xd4] ss:$8 sps:$4 sm:$0xff]   ;;  %v54_v39 = vpack.c.bf16 %v48_v35, %v45_v34  ;;  %v995_v40 = vld [vmem:[%s1441_s1 + $0xd0] ss:$8 sps:$4 sm:$0xff]   ;;  %v1022_v41 = vld [vmem:[%s1443_s3 + $0x28] sm:$0xff]  }
   0xe   :  { %v1023_v43 = vld [vmem:[%s1443_s3 + $0x20] sm:$0xff]   ;;  %v999_v45 = vld [vmem:[%s1441_s1 + $0xb4] ss:$8 sps:$4 sm:$0xff]  }
   0xf   :  { %314 = vmatpush1.bf16.msra.mxu0 %v974_v8  ;;  %375 = vmatpush1.bf16.msra.mxu1 %v1016_v22  ;;  %v998_v44 = vld [vmem:[%s1441_s1 + $0xc0] ss:$8 sps:$4 sm:$0xff]  }
  0x10   :  { %315 = vmatprep.subr.bf16.mxu0 %v975_v9  ;;  %543 = vmatprep.subr.bf16.mxu1 %v1092_v2 }
  0x12   :  { %901 = vmatmul.mubr.msk.bf16.vlgmr.msra.gmra.mxu1 %vm293_vm1, %v51_v30 }
  0x13   :  { %316 = vmatpush1.bf16.msra.mxu0 %v977_v10  ;;  %402 = vmatprep.mubr.bf16.mxu1 %v1092_v2 }
  0x14   :  { %317 = vmatprep.subr.bf16.mxu0 %v978_v11  ;;  %544 = vmatpush1.bf16.msra.mxu1 %v1020_v33 }
  0x15   :  { %545 = vmatprep.subr.bf16.mxu1 %v1092_v2 }
  0x17   :  { %318 = vmatpush1.bf16.msra.mxu0 %v980_v14 }
  0x18   :  { %319 = vmatprep.subr.bf16.mxu0 %v981_v15  ;;  %546 = vmatpush1.bf16.msra.mxu1 %v1021_v36 }
  0x19   :  { %547 = vmatprep.subr.bf16.mxu1 %v1092_v2 }
  0x1a   :  { %902 = vmatmul.mubr.msk.bf16.gmra.mxu1 %vm293_vm1, %v54_v39 }
  0x1b   :  { %320 = vmatpush1.bf16.msra.mxu0 %v983_v19 }
  0x1c   :  { %321 = vmatprep.subr.bf16.mxu0 %v984_v21  ;;  %548 = vmatpush1.bf16.msra.mxu1 %v1022_v41 }
  0x1d   :  { %549 = vmatprep.subr.bf16.mxu1 %v1092_v2 }
  0x1f   :  { %322 = vmatpush1.bf16.msra.mxu0 %v986_v27 }
  0x20   :  { %323 = vmatprep.subr.bf16.mxu0 %v987_v29 }
  0x23   :  { %324 = vmatpush2.bf16.msra.mxu0 %v989_v31 }
  0x24   :  { %325 = vmatprep.subr.bf16.mxu0 %v990_v32 }
  0x27   :  { %326 = vmatpush2.bf16.msra.mxu0 %v992_v37 }
  0x28   :  { %327 = vmatprep.subr.bf16.mxu0 %v993_v38 }
  0x2b   :  { %328 = vmatpush2.bf16.msra.mxu0 %v995_v40 }
  0x2c   :  { %329 = vmatprep.subr.bf16.mxu0 %v996_v42 }
  0x2d   :  { %17 = vsyncpa [#allocation5], 0  ;;  %550 = vmatpush1.bf16.msra.mxu1 %v1023_v43  ;;  %v1024_v46 = vld [vmem:[%s1443_s3 + $0x18] sm:$0xff]   ;;  %v1005_v48 = vld [vmem:[%s1441_s1 + $0xa4] ss:$8 sps:$4 sm:$0xff]   ;;  %vm539_vm2 = vcmask 1043456   ;;  %v95_v14 = vlaneseq }
  0x2e   :  { %551 = vmatprep.subr.bf16.mxu1 %v1092_v2  ;;  %v1003_v47 = vld [vmem:[%s1441_s1 + $0xb0] ss:$8 sps:$4 sm:$0xff]   ;;  %v1009_v50 = vld [vmem:[%s1441_s1 + $0xa0] ss:$8 sps:$4 sm:$0xff]   ;;  %v1011_v51 = vld [vmem:[%s1441_s1 + $0x94] ss:$8 sps:$4 sm:$0xff]  }
  0x2f   :  { %330 = vmatpush2.bf16.msra.mxu0 %v998_v44  ;;  %v1025_v49 = vld [vmem:[%s1443_s3 + $0x10] sm:$0xff]   ;;  %v1026_v52 = vld [vmem:[%s1443_s3 + $0x8] sm:$0xff]   ;;  %v1027_v55 = vld [vmem:[%s1443_s3] sm:$0xff]   ;;  %vm664_vm3 = vcmask 1041408   ;;  %v1369_v16 = vshrl.u32 %v95_v14, 7  ;;  %vm532_vm4 = vcmask 588800  }
  0x30   :  { %331 = vmatprep.subr.bf16.mxu0 %v999_v45  ;;  %v1015_v53 = vld [vmem:[%s1441_s1 + $0x90] ss:$8 sps:$4 sm:$0xff]   ;;  %v1017_v54 = vld [vmem:[%s1441_s1 + $0x84] ss:$8 sps:$4 sm:$0xff]   ;;  %v1019_v56 = vld [vmem:[%s1441_s1 + $0x80] ss:$8 sps:$4 sm:$0xff]  }
  0x31   :  { %552 = vmatpush1.bf16.msra.mxu1 %v1024_v46  ;;  %v37_v57 = vld [vmem:[%s1440_s0] sm:$0xff]  ;;  %v40_v58 = vld [vmem:[%s1440_s0 + $0x18] sm:$0xff]  ;;  %v47_v60 = vld [vmem:[%s1440_s0 + $0x50] sm:$0xff]  ;;  %v101_v17 = vsub.s32 1, %v1369_v16  ;;  %v97_v18 = vsub.s32 0, %v1369_v16  ;;  %vm657_vm5 = vcmask 818176  }
  0x32   :  { %553 = vmatprep.subr.bf16.mxu1 %v1092_v2  ;;  %v44_v59 = vld [vmem:[%s1440_s0 + $0x38] sm:$0xff]  ;;  %v49_v61 = vpack.c.bf16 %v40_v58, %v37_v57  ;;  %v43_v63 = vld [vmem:[%s1440_s0 + $0x30] sm:$0xff]  ;;  %v46_v0 = vld [vmem:[%s1440_s0 + $0x48] sm:$0xff]  ;;  %vm753_vm8 = vcmask 254976  }
  0x33   :  { %332 = vmatpush2.bf16.msra.mxu0 %v1003_v47  ;;  %v53_v62 = vpack.c.bf16 %v47_v60, %v44_v59  ;;  %v52_v1 = vpack.c.bf16 %v46_v0, %v43_v63  ;;  %v1028_v3 = vld [vmem:[%s1443_s3 + $0x60] ss:$0 sps:$4 sm:$0xff]   ;;  %v1029_v5 = vld [vmem:[%s1443_s3 + $0x58] sm:$0xff]   ;;  %v1030_v6 = vld [vmem:[%s1443_s3 + $0x50] sm:$0xff]  }
  0x34   :  { %333 = vmatprep.subr.bf16.mxu0 %v1005_v48  ;;  %v541_v4 = vsel %vm539_vm2, %v1028_v3, 0  ;;  %v1031_v7 = vld [vmem:[%s1443_s3 + $0x48] sm:$0xff]   ;;  %v1032_v8 = vld [vmem:[%s1443_s3 + $0x40] sm:$0xff]   ;;  %v1033_v9 = vld [vmem:[%s1445_s5 + $0x30] ss:$0 sps:$4 sm:$0x33]  }
  0x35   :  { %554 = vmatpush1.bf16.msra.mxu1 %v1025_v49  ;;  %v1034_v10 = vld [vmem:[%s1445_s5 + $0x28] sm:$0xff]   ;;  %v666_v11 = vsel %vm664_vm3, %v1033_v9, 0  ;;  %v1035_v12 = vld [vmem:[%s1445_s5 + $0x20] sm:$0xff]   ;;  %v1036_v0 = vld [vmem:[%s1445_s5 + $0x18] sm:$0xff]  }
  0x36   :  { %555 = vmatprep.subr.bf16.mxu1 %v1092_v2  ;;  %v93_v20 = vld [vmem:[%s1442_s2] sm:$0x3]  ;;  %v1038_v3 = vld [vmem:[%s1445_s5 + $0x8] sm:$0xff]  }
  0x37   :  { %334 = vmatpush2.bf16.msra.mxu0 %v1009_v50  ;;  %v102_v21 = vrot.slane %v93_v20, %v101_v17  ;;  %v98_v22 = vrot.slane %v93_v20, %v97_v18 }
  0x38   :  { %335 = vmatprep.subr.bf16.mxu0 %v1011_v51 }
  0x39   :  { %556 = vmatpush1.bf16.msra.mxu1 %v1026_v52 }
  0x3a   :  { %557 = vmatprep.subr.bf16.mxu1 %v1092_v2 }
  0x3b   :  { %336 = vmatpush2.bf16.msra.mxu0 %v1015_v53 }
  0x3c   :  { %337 = vmatprep.subr.bf16.mxu0 %v1017_v54 }
  0x3d   :  { %558 = vmatpush1.bf16.msra.mxu1 %v1027_v55 }
  0x3e   :  { %565 = vmatprep.subr.bf16.mxu1 %v1092_v2 }
  0x3f   :  { %338 = vmatpush2.bf16.msra.mxu0 %v1019_v56 }
  0x40   :  { %956 = vmatprep.subr.msk.bf16.mxu0 %vm664_vm3, %v1033_v9 }
  0x41   :  { %566 = vmatpush2.bf16.msra.mxu1 %v541_v4  ;;  %v1039_v4 = vld [vmem:[%s1445_s5] sm:$0xff]  }
  0x42   :  { %340 = vmatmul.mubr.bf16.vlgmr.msra.gmra.mxu0 %v49_v61  ;;  %567 = vmatprep.subr.bf16.mxu1 %v1092_v2 }
  0x43   :  { %349 = vmatprep.mubr.bf16.mxu0 %v53_v62  ;;  %939 = vmatpush3.bf16.msra.mxu0 %v666_v11 }
  0x44   :  { %940 = vmatprep.subr.bf16.mxu0 %v1034_v10 }
  0x45   :  { %568 = vmatpush2.bf16.msra.mxu1 %v1029_v5  ;;  %v903_v5 = vld [vmem:[%s1444_s4] ss:$0 sm:$0xff] }
  0x46   :  { %569 = vmatprep.subr.bf16.mxu1 %v1092_v2 }
  0x47   :  { %941 = vmatpush3.bf16.msra.mxu0 %v1034_v10 }
  0x48   :  { %942 = vmatprep.subr.bf16.mxu0 %v1035_v12 }
  0x49   :  { %570 = vmatpush2.bf16.msra.mxu1 %v1030_v6 }
  0x4a   :  { %350 = vmatmul.mubr.bf16.gmra.mxu0 %v52_v1  ;;  %571 = vmatprep.subr.bf16.mxu1 %v1092_v2  ;;  %v1037_v1 = vld [vmem:[%s1445_s5 + $0x10] sm:$0xff]  }
  0x4b   :  { %943 = vmatpush3.bf16.msra.mxu0 %v1035_v12 }
  0x4c   :  { %944 = vmatprep.subr.bf16.mxu0 %v1036_v0 }
  0x4d   :  { %572 = vmatpush2.bf16.msra.mxu1 %v1031_v7 }
  0x4e   :  { %573 = vmatprep.subr.bf16.mxu1 %v1092_v2 }
  0x4f   :  { %945 = vmatpush3.bf16.msra.mxu0 %v1036_v0 }
  0x50   :  { %946 = vmatprep.subr.bf16.mxu0 %v1037_v1 }
  0x51   :  { %574 = vmatpush2.bf16.msra.mxu1 %v1032_v8 }
  0x53   :  { %947 = vmatpush3.bf16.msra.mxu0 %v1037_v1 }
  0x54   :  { %948 = vmatprep.subr.bf16.mxu0 %v1038_v3 }
  0x57   :  { %949 = vmatpush3.bf16.msra.mxu0 %v1038_v3 }
  0x58   :  { %950 = vmatprep.subr.bf16.mxu0 %v1039_v4 }
  0x5b   :  { %951 = vmatpush3.bf16.msra.mxu0 %v1039_v4 }
  0xd2   :  { %v394_v13 = vpop.f32.mrf.mxu1 }
  0xd4   :  { %v396_v15 = vpop.f32.mrf.mxu1 }
  0xd6   :  { %v398_v19 = vpop.f32.mrf.mxu1 }
  0xd8   :  { %v400_v24 = vpop.f32.mrf.mxu1 }
  0xda   :  { %v404_v29 = vpop.f32.mrf.mxu1 }
  0xdc   :  { %v406_v36 = vpop.f32.mrf.mxu1 }
  0xde   :  { %v408_v46 = vpop.f32.mrf.mxu1 }
  0xe0   :  { %v410_v56 = vpop.f32.mrf.mxu1 }
 0x102   :  { %v341_v23 = vpop.f32.mrf.mxu0 }
 0x103   :  { %v342_v27 = vadd.f32 %v341_v23, %v98_v22 }
 0x104   :  { %v343_v25 = vpop.f32.mrf.mxu0 }
 0x105   :  { %v344_v26 = vadd.f32 %v343_v25, %v102_v21  ;;  %v395_v35 = vadd.f32 %v394_v13, %v342_v27 }
 0x106   :  { %v345_v28 = vpop.f32.mrf.mxu0 }
 0x107   :  { %v346_v30 = vadd.f32 %v345_v28, %v98_v22  ;;  %v397_v32 = vadd.f32 %v396_v15, %v344_v26  ;;  %v413_v44 = vmax.f32 %v395_v35, 0.0 }
 0x108   :  { %v347_v31 = vpop.f32.mrf.mxu0 }
 0x109   :  { %v399_v33 = vadd.f32 %v398_v19, %v346_v30  ;;  %v348_v34 = vadd.f32 %v347_v31, %v102_v21  ;;  %v414_v41 = vmax.f32 %v397_v32, 0.0 }
 0x10a   :  { %v351_v37 = vpop.f32.mrf.mxu0 }
 0x10b   :  { %v401_v38 = vadd.f32 %v400_v24, %v348_v34  ;;  %v415_v39 = vmax.f32 %v399_v33, 0.0  ;;  %v352_v45 = vadd.f32 %v351_v37, %v98_v22 }
 0x10c   :  { %v353_v40 = vpop.f32.mrf.mxu0 }
 0x10d   :  { %v416_v42 = vmax.f32 %v401_v38, 0.0  ;;  %v354_v43 = vadd.f32 %v353_v40, %v102_v21  ;;  %v421_v50 = vpack.c.bf16 %v415_v39, %v413_v44  ;;  %v405_v55 = vadd.f32 %v404_v29, %v352_v45  ;;  %v919_v29 = vld [vmem:[%s1446_s6] ss:$0 sm:$0xff] }
 0x10e   :  { %v355_v47 = vpop.f32.mrf.mxu0  ;;  %v760_v44 = vmul.u32 16, %v1369_v16 }
 0x10f   :  { %v422_v48 = vpack.c.bf16 %v416_v42, %v414_v41  ;;  %v356_v49 = vadd.f32 %v355_v47, %v98_v22  ;;  %v407_v52 = vadd.f32 %v406_v36, %v354_v43  ;;  %v417_v61 = vmax.f32 %v405_v55, 0.0  ;;  %v794_v41 = vld [vmem:[%s1448_s8] sm:$0x3] }
 0x110   :  { %v357_v51 = vpop.f32.mrf.mxu0  ;;  %v762_v42 = vadd.s32 1, %v1369_v16  ;;  %v757_v43 = vand.u32 127, %v95_v14 }
 0x111   :  { %v409_v53 = vadd.f32 %v408_v46, %v356_v49  ;;  %v358_v54 = vadd.f32 %v357_v51, %v102_v21  ;;  %917 = vmatprep.mubr.msk.bf16.mxu1 %vm532_vm4, %v422_v48  ;;  %v418_v59 = vmax.f32 %v407_v52, 0.0 }
 0x112   :  { %576 = vmatmul.mubr.bf16.vlgmr.msra.gmra.mxu1 %v421_v50  ;;  %v763_v45 = vmul.u32 16, %v762_v42  ;;  %vm761_vm6 = vcmp.ge.s32.totalorder %v757_v43, %v760_v44 }
 0x113   :  { %v411_v57 = vadd.f32 %v410_v56, %v358_v54  ;;  %v419_v58 = vmax.f32 %v409_v53, 0.0 }
 0x114   :  { %vm764_vm7 = vcmp.lt.s32.totalorder %v757_v43, %v763_v45 }
 0x115   :  { %v420_v60 = vmax.f32 %v411_v57, 0.0  ;;  %v423_v63 = vpack.c.bf16 %v419_v58, %v417_v61  ;;  %vm1407_vm9 = vmand %vm761_vm6, %vm764_vm7 }
 0x117   :  { %v424_v62 = vpack.c.bf16 %v420_v60, %v418_v59 }
 0x119   :  { %918 = vmatprep.mubr.msk.bf16.mxu1 %vm532_vm4, %v424_v62 }
 0x11a   :  { %584 = vmatmul.mubr.bf16.gmra.mxu1 %v423_v63 }
 0x1d2   :  { %v577_v6 = vpop.f32.mrf.mxu1 }
 0x1d3   :  { %v578_v8 = vadd.f32 %v903_v5, %v577_v6 }
 0x1d4   :  { %v579_v7 = vpop.f32.mrf.mxu1 }
 0x1d5   :  { %v592_v12 = vmax.f32 %v578_v8, 0.0 }
 0x1d6   :  { %v580_v9 = vpop.f32.mrf.mxu1 }
 0x1d7   :  { %v581_v10 = vadd.f32 %v903_v5, %v580_v9 }
 0x1d8   :  { %v582_v11 = vpop.f32.mrf.mxu1 }
 0x1d9   :  { %v593_v13 = vmax.f32 %v581_v10, 0.0 }
 0x1da   :  { %v585_v15 = vpop.f32.mrf.mxu1 }
 0x1db   :  { %v596_v19 = vpack.c.bf16 %v593_v13, %v592_v12  ;;  %v586_v21 = vadd.f32 %v903_v5, %v585_v15 }
 0x1dc   :  { %v587_v20 = vpop.f32.mrf.mxu1 }
 0x1dd   :  { %952 = vmatprep.mubr.msk.bf16.mxu0 %vm657_vm5, %v596_v19  ;;  %v594_v25 = vmax.f32 %v586_v21, 0.0 }
 0x1de   :  { %v588_v22 = vpop.f32.mrf.mxu1 }
 0x1df   :  { %v589_v23 = vadd.f32 %v903_v5, %v588_v22 }
 0x1e0   :  { %v590_v24 = vpop.f32.mrf.mxu1 }
 0x1e1   :  { %v595_v26 = vmax.f32 %v589_v23, 0.0 }
 0x1e3   :  { %v597_v27 = vpack.c.bf16 %v595_v26, %v594_v25 }
 0x1e5   :  { %953 = vmatmul.mubr.msk.bf16.vlgmr.msra.gmra.mxu0 %vm657_vm5, %v597_v27 }
 0x2a5   :  { %v954_v28 = vpop.f32.mrf.mxu0 }
 0x2a6   :  { %v711_v36 = vadd.f32 %v954_v28, %v919_v29 }
 0x2a7   :  { %v702_v30 = vpop.f32.mrf.mxu0 }
 0x2a8   :  { %v703_v31 = vadd.f32 %v919_v29, %v702_v30  ;;  %v719_v38 = vmax.f32 %v711_v36, 0.0 }
 0x2a9   :  { %v955_v32 = vpop.f32.mrf.mxu0 }
 0x2aa   :  { %v717_v33 = vmax.f32 %v703_v31, 0.0  ;;  %v714_v39 = vadd.f32 %v955_v32, %v919_v29 }
 0x2ab   :  { %v705_v34 = vpop.f32.mrf.mxu0 }
 0x2ac   :  { %v706_v35 = vadd.f32 %v919_v29, %v705_v34  ;;  %721 = vxpose.xlu0.b32.start [1/4] (short) (narrow) %v717_v33, 8  ;;  %v720_v40 = vmax.f32 %v714_v39, 0.0 }
 0x2ae   :  { %v718_v37 = vmax.f32 %v706_v35, 0.0 }
 0x2b0   :  { %722 = vxpose.xlu0.b32.cont [2/4] (short) (narrow) %v718_v37, 8 }
 0x2b4   :  { %723 = vxpose.xlu0.b32.cont [3/4] (short) (narrow) %v719_v38, 8 }
 0x2b8   :  { %724 = vxpose.xlu0.b32.end [4/4] (short) (narrow) %v720_v40, 8 }
 0x2e1   :  { %962 = vset.pattern.permute.xlu0 %v1092_v2 }
 0x2e2   :  { %811 = vperm.xlu0 %962, %v794_v41  }
 0x328   :  { %v737_v46 = vpop.trf.xlu0 }
 0x329   :  { %v769_v48 = vrot.slane %v737_v46, %v97_v18  ;;  %v798_v2 = vrot.slane %v737_v46, %v101_v17  ;;  %754 = vst.msk [vmem:[#allocation2] sm:$0x3] %vm753_vm8, %v737_v46  ;;  %v755_v18 = vld [vmem:[%s1447_s7] sm:$0x3]  ;;  %s1093_s7 = smov [#allocation2]  }
 0x32a   :  { %s840_s13 = sshll.u32 %s1093_s7, 4  ;;  %s841_s13 = int_to_ptr.vmem [resolvable:$true] %s840_s13 }
 0x32b   :  { %v770_v14 = vsel %vm1407_vm9, %v769_v48, -inf  ;;  %v799_v50 = vsel %vm1407_vm9, %v798_v2, -inf  ;;  %s1048_s14 = scalar_lea.vmem %s841_s13, 32  ;;  %p1053_p1 = scmp.lt.s32.totalorder %s841_s13, %s841_s13 }
 0x32c   :  { %v771_v49 = vsel %vm753_vm8, %v770_v14, -inf  ;;  %v800_v51 = vsel %vm753_vm8, %v799_v50, -inf  ;;  %p1049_p0 = scmp.ne.s32.totalorder %s841_s13, %s1048_s14  ;;  %p1054_p2 = scmp.lt.s32.totalorder %s1048_s14, %s1048_s14 }
 0x32d   :  { %772 = vmax.xlane.f32.xlu1 %v771_v49 }
 0x32e   :  { %p1055_p3 = por %p1054_p2, %p1053_p1 }
 0x330   :  { %p1056_p4 = pnand %p1055_p3, %p1049_p0 }
 0x331   :  { %801 = vmax.xlane.f32.xlu1 %v800_v51 }
 0x342   :  { %782 = vperm.xlu1 %961, %v755_v18  }
 0x35d   :  { %v812_v58 = vpop.permute.xlu0 %811 }
 0x35e   :  { %v813_v60 = vadd.s32 %v812_v58, %v760_v44 }
 0x360   :  { %vm814_vm11 = vcmp.eq.s32.totalorder %v757_v43, %v813_v60 }
 0x361   :  { %v815_v5 = vsel %vm814_vm11, %v798_v2, 0.0 }
 0x362   :  { %v816_v6 = vsel %vm753_vm8, %v815_v5, 0.0 }
 0x3b6   :  { %v773_v16 = vpop.xlane.xlu1 %772 }
 0x3b7   :  { %v774_v17 = vsub.f32 %v769_v48, %v773_v16 }
 0x3b9   :  { %v775_v52 = vmul.f32 1.442695, %v774_v17 }
 0x3ba   :  { %v802_v53 = vpop.xlane.xlu1 %801 }
 0x3bb   :  { %1040 = vpow2.f32 %v775_v52  ;;  %v803_v54 = vsub.f32 %v798_v2, %v802_v53 }
 0x3bd   :  { %v804_v55 = vmul.f32 1.442695, %v803_v54 }
 0x3be   :  { %v783_v56 = vpop.permute.xlu1 %782 }
 0x3bf   :  { %1042 = vpow2.f32 %v804_v55  ;;  %v784_v57 = vadd.s32 %v783_v56, %v760_v44 }
 0x3c1   :  { %vm785_vm10 = vcmp.eq.s32.totalorder %v757_v43, %v784_v57 }
 0x3c2   :  { %v786_v63 = vsel %vm785_vm10, %v769_v48, 0.0 }
 0x3c3   :  { %v787_v4 = vsel %vm753_vm8, %v786_v63, 0.0 }
 0x3c8   :  { %v1041_v59 = vpop.eup %1040 }
 0x3c9   :  { %v777_v61 = vsel %vm1407_vm9, %v1041_v59, 0.0 }
 0x3ca   :  { %v778_v62 = vsel %vm753_vm8, %v777_v61, 0.0 }
 0x3cb   :  { %779 = vadd.xlane.f32.xlu1 %v778_v62 }
 0x3cc   :  { %v1043_v0 = vpop.eup %1042 }
 0x3cd   :  { %v806_v1 = vsel %vm1407_vm9, %v1043_v0, 0.0 }
 0x3ce   :  { %v807_v3 = vsel %vm753_vm8, %v806_v1, 0.0 }
 0x3cf   :  { %808 = vadd.xlane.f32.xlu0 %v807_v3  ;;  %788 = vadd.xlane.f32.xlu1 %v787_v4 }
 0x3d3   :  { %817 = vadd.xlane.f32.xlu1 %v816_v6 }
 0x3d4   :  { %1059 = shalt.err (!%p1056_p4)
}
 0x3d5   :  { %843 = dma.vmem_to_hbm [thread:$0]  %s841_s13, 32, %s1449_s9, [#allocation3]   ;;  %vm832_vm12 = vcmask 0  }
 0x3d6   :  { %s1094_s9 = smov [#allocation4]  }
 0x3d7   :  { %s850_s17 = sshll.u32 %s1094_s9, 4  ;;  %s851_s17 = int_to_ptr.vmem [resolvable:$true] %s850_s17 }
 0x3d8   :  { %s1068_s18 = scalar_lea.vmem %s851_s17, 16  ;;  %s1072_s19 = scalar_lea.vmem %s851_s17, 32 }
 0x3d9   :  { %p1069_p5 = scmp.ne.s32.totalorder %s851_s17, %s1068_s18  ;;  %p1073_p6 = scmp.lt.s32.totalorder %s851_s17, %s851_s17 }
 0x3da   :  { %p1074_p7 = scmp.lt.s32.totalorder %s1072_s19, %s1068_s18 }
 0x3dc   :  { %p1075_p8 = por %p1074_p7, %p1073_p6 }
 0x3de   :  { %p1076_p9 = pnand %p1075_p8, %p1069_p5 }
 0x454   :  { %v780_v7 = vpop.xlane.xlu1 %779 }
 0x455   :  { %1044 = vlog2.f32 %v780_v7 }
 0x458   :  { %v809_v8 = vpop.xlane.xlu0 %808  ;;  %v789_v11 = vpop.xlane.xlu1 %788 }
 0x459   :  { %1046 = vlog2.f32 %v809_v8 }
 0x45c   :  { %v818_v20 = vpop.xlane.xlu1 %817 }
 0x462   :  { %v1045_v9 = vpop.eup %1044 }
 0x463   :  { %v791_v10 = vmul.f32 0.6931472, %v1045_v9 }
 0x465   :  { %v792_v13 = vadd.f32 %v791_v10, %v773_v16 }
 0x466   :  { %v1047_v12 = vpop.eup %1046 }
 0x467   :  { %v820_v15 = vmul.f32 0.6931472, %v1047_v12  ;;  %v793_v21 = vsub.f32 %v792_v13, %v789_v11 }
 0x469   :  { %v821_v19 = vadd.f32 %v820_v15, %v802_v53 }
 0x46b   :  { %v822_v22 = vsub.f32 %v821_v19, %v818_v20 }
 0x46d   :  { %v823_v23 = vadd.f32 %v822_v22, %v793_v21 }
 0x46f   :  { %v824_v24 = vsel %vm664_vm3, %v823_v23, 0.0 }
 0x470   :  { %v825_v25 = vrot.slane %v824_v24, 4 }
 0x472   :  { %v826_v26 = vadd.f32 %v825_v25, %v824_v24 }
 0x474   :  { %v827_v27 = vrot.slane %v826_v26, 2 }
 0x476   :  { %v828_v28 = vadd.f32 %v827_v27, %v826_v26 }
 0x478   :  { %v829_v29 = vrot.slane %v828_v28, 1 }
 0x47a   :  { %v830_v30 = vadd.f32 %v829_v29, %v828_v28 }
 0x47c   :  { %v831_v31 = vmul.f32 0.25, %v830_v30 }
 0x47e   :  { %833 = vst.msk [vmem:[#allocation4] sm:$0x1] %vm832_vm12, %v831_v31 }
 0x47f   :  { %1079 = shalt.err (!%p1076_p9)
}
 0x480   :  { %853 = dma.vmem_to_hbm [thread:$0]  %s851_s17, 16, %s1450_s10, [#allocation5]  }
 0x481   :  { %1088 = dma.done.wait [#allocation3], 32  }
 0x482   :  { %1089 = vsyncadd [#allocation3], 4294967264 }
 0x483   :  { %1090 = dma.done.wait [#allocation5], 16  }
 0x484   :  { %1091 = vsyncadd [#allocation5], 4294967280 }
 0x485   :  { %860 = vsyncpa [#allocation3], 1 }
 0x486   :  { %861 = vsyncpa [#allocation5], 1 }

</bundles_post_ra>
